<compile_context>
chip_gen: v6e
topology: v6e:2x2x1
jax: 0.10.0
libtpu: 0.0.40
codegen_flags: <defaults>
</compile_context>

<pallas_src>
import jax
import jax.numpy as jnp
from jax.experimental import pallas as pl
from jax.experimental.pallas import tpu as pltpu


def _copy_kernel(x_ref, o_ref):
    # Both refs carry identically-laid-out (TN, n_colors, ...) tiles; the
    # (color, l, part) -> (l, color, part) permutation is expressed entirely
    # in the BlockSpec index_maps, so the body is a pure copy.
    o_ref[...] = x_ref[...]


def _vmem_capacity_bytes():
    """Physical VMEM per TensorCore (generation aware), with a safe fallback."""
    try:
        return int(pltpu.get_tpu_info().vmem_capacity_bytes)
    except Exception:
        return 64 << 20  # conservative: v7x per-TC VMEM


def _largest_divisor_leq(n, limit):
    best = 1
    for d in range(1, n + 1):
        if n % d == 0 and d <= limit:
            best = d
    return best


def _pick_s_chunk(s, limit):
    """Largest divisor of s that is a multiple of 8 sublanes (or == s) and
    <= limit; if none fits, the smallest legal chunk (minimize footprint)."""
    legal = [d for d in range(1, s + 1) if s % d == 0 and (d % 8 == 0 or d == s)]
    fitting = [d for d in legal if d <= limit]
    return max(fitting) if fitting else min(legal)


def _make_spec(block_shape, index_map, buffer_count):
    if buffer_count is not None:
        try:
            return pl.BlockSpec(block_shape, index_map,
                                pipeline_mode=pl.Buffered(buffer_count))
        except TypeError:
            pass  # older BlockSpec signature without pipeline_mode
    return pl.BlockSpec(block_shape, index_map)


def group_rgb_channels_ref(x, n_colors, complex_featmaps=True):
    """Pure-JAX reference mirroring the PyTorch forward exactly."""
    n_imgs, in_channels, H, W = x.shape
    if complex_featmaps:
        y = x.reshape(n_imgs, n_colors, -1, 2, H, W)
        y = jnp.transpose(y, (0, 2, 1, 3, 4, 5))
    else:
        y = x.reshape(n_imgs, n_colors, -1, H, W)
        y = jnp.transpose(y, (0, 2, 1, 3, 4))
    return y.reshape(n_imgs, -1, H, W)


def group_rgb_channels(x, n_colors, complex_featmaps=True, use_pallas=None):
    """Pallas implementation of GroupRGBChannels.forward (NCHW layout)."""
    n_imgs, in_channels, H, W = x.shape
    parts = 2 if complex_featmaps else 1
    assert in_channels % (n_colors * parts) == 0
    L = in_channels // (n_colors * parts)
    HW = H * W
    PHW = parts * HW
    elem = x.dtype.itemsize
    total_bytes = x.size * elem

    # Tiny tensors: the Pallas path is pure launch/step overhead; let XLA's
    # fused transpose handle it unless the caller forces the kernel.
    if use_pallas is None:
        use_pallas = total_bytes >= (2 << 20)
    if not use_pallas:
        return group_rgb_channels_ref(x, n_colors, complex_featmaps)

    # Generation-aware VMEM budget: double-buffered input + output blocks plus
    # headroom for Mosaic internal scratch must fit physical VMEM.
    cap = _vmem_capacity_bytes()
    max_block_bytes = max((cap - (4 << 20)) // 4, 1 << 20)

    group_bytes = n_colors * PHW * elem  # one (n, l) channel group
    cost = pl.CostEstimate(flops=0, transcendentals=0,
                           bytes_accessed=2 * total_bytes)

    if PHW % 128 == 0:
        # Dense path: trailing dims become (S, 128) so every (8,128) tile is
        # fully populated in both sublanes and lanes.
        S = PHW // 128
        if group_bytes <= max_block_bytes:
            SC = S
            TN = _largest_divisor_leq(n_imgs, max(1, max_block_bytes // group_bytes))
            # Keep at least 2 parallel grid steps for v7x megacore when possible.
            if L == 1 and n_imgs // TN == 1 and n_imgs > 1:
                TN = _largest_divisor_leq(n_imgs, n_imgs // 2)
        else:
            # One channel group alone exceeds the budget: chunk along S.
            TN = 1
            sc_limit = max(1, max_block_bytes // (n_colors * 128 * elem))
            SC = _pick_s_chunk(S, sc_limit)

        block_bytes = TN * n_colors * SC * 128 * elem
        grid = (n_imgs // TN, L, S // SC)
        total_steps = grid[0] * grid[1] * grid[2]
        bufcount = 3 if (block_bytes < (256 << 10) and total_steps >= 16) else None

        x_in = x.reshape(n_imgs, n_colors, L, S, 128)
        in_spec = _make_spec((TN, n_colors, None, SC, 128),
                             lambda n, l, s: (n, 0, l, s, 0), bufcount)
        out_spec = _make_spec((TN, None, n_colors, SC, 128),
                              lambda n, l, s: (n, l, 0, s, 0), bufcount)
        out_shape = jax.ShapeDtypeStruct((n_imgs, L, n_colors, S, 128), x.dtype)
    else:
        # Fallback: merge (parts, HW) into a single lane-dense last dim; the
        # last two block dims equal the full array dims, satisfying (8,128).
        TN = _largest_divisor_leq(n_imgs, max(1, max_block_bytes // group_bytes))
        block_bytes = TN * group_bytes
        grid = (n_imgs // TN, L)
        total_steps = grid[0] * grid[1]
        bufcount = 3 if (block_bytes < (256 << 10) and total_steps >= 16) else None

        x_in = x.reshape(n_imgs, n_colors, L, PHW)
        in_spec = _make_spec((TN, n_colors, None, PHW),
                             lambda n, l: (n, 0, l, 0), bufcount)
        out_spec = _make_spec((TN, None, n_colors, PHW),
                              lambda n, l: (n, l, 0, 0), bufcount)
        out_shape = jax.ShapeDtypeStruct((n_imgs, L, n_colors, PHW), x.dtype)

    # Explicit VMEM limit from the actual pipelined footprint (handles the
    # 16 MiB v5e default and leaves headroom within v7x's 64 MiB).
    nbuf = bufcount if bufcount is not None else 2
    footprint = 2 * nbuf * block_bytes + (4 << 20)
    vmem_limit = int(min(cap, max(32 << 20, footprint)))

    out = pl.pallas_call(
        _copy_kernel,
        out_shape=out_shape,
        grid=grid,
        in_specs=[in_spec],
        out_specs=out_spec,
        compiler_params=pltpu.CompilerParams(
            dimension_semantics=("parallel",) * len(grid),
            vmem_limit_bytes=vmem_limit),
        cost_estimate=cost,
    )(x_in)

    # Back to NCHW with channels grouped as (l, color, part).
    return out.reshape(n_imgs, in_channels, H, W)


if __name__ == "__main__":
    key = jax.random.PRNGKey(0)

    # Small, deterministic example consistent with the module:
    #   n_colors = 3 (RGB), L = 4 wavelet packet filters, complex featmaps
    #   => in_channels = 3 * 4 * 2 = 24
    n_imgs, n_colors, L, H, W = 2, 3, 4, 16, 16

    # complex_featmaps=True (dense lane path: parts*H*W % 128 == 0)
    in_channels = n_colors * L * 2
    x = jax.random.normal(key, (n_imgs, in_channels, H, W), dtype=jnp.float32)
    y = jax.block_until_ready(group_rgb_channels(x, n_colors, True, use_pallas=True))
    y_ref = group_rgb_channels_ref(x, n_colors, True)
    assert y.shape == x.shape
    assert jnp.array_equal(y, y_ref), "Pallas output mismatch (complex featmaps)"

    # complex_featmaps=False (parts = 1), still the dense path
    in_channels_r = n_colors * L
    xr = jax.random.normal(key, (n_imgs, in_channels_r, H, W), dtype=jnp.float32)
    yr = jax.block_until_ready(group_rgb_channels(xr, n_colors, False, use_pallas=True))
    yr_ref = group_rgb_channels_ref(xr, n_colors, False)
    assert jnp.array_equal(yr, yr_ref), "Pallas output mismatch (real featmaps)"

    # Odd spatial size exercises the lane-merged fallback path (parts*H*W % 128 != 0)
    xo = jax.random.normal(key, (n_imgs, n_colors * 2 * 2, 10, 10), dtype=jnp.float32)
    yo = jax.block_until_ready(group_rgb_channels(xo, n_colors, True, use_pallas=True))
    yo_ref = group_rgb_channels_ref(xo, n_colors, True)
    assert jnp.array_equal(yo, yo_ref), "Pallas output mismatch (odd spatial)"

    # Auto dispatch: tiny tensors take the pure-JAX transpose path.
    ya = group_rgb_channels(x, n_colors, True)
    assert jnp.array_equal(ya, y_ref), "auto-dispatch mismatch"

    print("KERNEL_OK")
</pallas_src>

<mosaic_0001>
module attributes {stable_mosaic.version = 11 : i64} {
  func.func @_copy_kernel(%arg0: i32, %arg1: i32, %arg2: i32, %arg3: memref<2x3x1x4x128xf32, #tpu.memory_space<vmem>>, %arg4: memref<2x1x3x4x128xf32, #tpu.memory_space<vmem>>) attributes {dimension_semantics = [#tpu.dimension_semantics<parallel>, #tpu.dimension_semantics<parallel>, #tpu.dimension_semantics<parallel>], iteration_bounds = array<i64: 1, 4, 1>, scalar_prefetch = 0 : i64, scratch_operands = 0 : i64, tpu.core_type = #tpu.core_type<tc>, window_params = [{transform_indices = @transform_0, window_bounds = array<i64: 2, 3, 1, 4, 128>}, {transform_indices = @transform_1, window_bounds = array<i64: 2, 1, 3, 4, 128>}]} {
    %c0 = arith.constant 0 : index
    %c0_0 = arith.constant 0 : index
    %c0_1 = arith.constant 0 : index
    %c0_2 = arith.constant 0 : index
    %c0_3 = arith.constant 0 : index
    %0 = vector.load %arg3[%c0, %c0_0, %c0_1, %c0_2, %c0_3] : memref<2x3x1x4x128xf32, #tpu.memory_space<vmem>>, vector<2x3x1x4x128xf32>
    %1 = vector.shape_cast %0 : vector<2x3x1x4x128xf32> to vector<2x3x4x128xf32>
    %c0_4 = arith.constant 0 : index
    %c0_5 = arith.constant 0 : index
    %c0_6 = arith.constant 0 : index
    %c0_7 = arith.constant 0 : index
    %c0_8 = arith.constant 0 : index
    %2 = vector.load %arg4[%c0_4, %c0_5, %c0_6, %c0_7, %c0_8] : memref<2x1x3x4x128xf32, #tpu.memory_space<vmem>>, vector<2x1x3x4x128xf32>
    %3 = vector.shape_cast %2 : vector<2x1x3x4x128xf32> to vector<2x3x4x128xf32>
    %4 = vector.shape_cast %1 : vector<2x3x4x128xf32> to vector<2x1x3x4x128xf32>
    tpu.vector_store %arg4[%c0_4, %c0_5, %c0_6, %c0_7, %c0_8], %4 {strides = array<i32>} : memref<2x1x3x4x128xf32, #tpu.memory_space<vmem>>, vector<2x1x3x4x128xf32>,
    return
  }
  func.func @transform_0(%arg0: i32, %arg1: i32, %arg2: i32) -> (i32, i32, i32, i32, i32) {
    %c0_i32 = arith.constant 0 : i32
    %c0_i32_0 = arith.constant 0 : i32
    %c0_i32_1 = arith.constant 0 : i32
    return %arg0, %c0_i32, %arg1, %arg2, %c0_i32_0 : i32, i32, i32, i32, i32
  }
  func.func @transform_1(%arg0: i32, %arg1: i32, %arg2: i32) -> (i32, i32, i32, i32, i32) {
    %c0_i32 = arith.constant 0 : i32
    %c0_i32_0 = arith.constant 0 : i32
    %c0_i32_1 = arith.constant 0 : i32
    return %arg0, %arg1, %c0_i32, %arg2, %c0_i32_0 : i32, i32, i32, i32, i32
  }
}

</mosaic_0001>

<bundles_post_ra>
// kernel: tpu_custom_call.1
= control target key start
LH: loop header
LB: loop body
LE: loop exit
PB: predicated region body
PF: predicated region fallthrough
CT: control target
= control target key end

     0   :  { %6 = vsyncpa [#allocation3], 0  ;;  %s636_s0 = inlined_call_operand.hbm [shape: f32[2,3,4,4,128], index: 0, kind: input, shape index: {}]   ;;  %s637_s1 = inlined_call_operand.hbm [shape: f32[2,4,3,4,128], index: 1, kind: output, shape index: {}]  }
   0x1   :  { %8 = vsyncpa [#allocation3 + $0x1], 0 }
   0x2   :  { %9 = vsyncpa [#allocation4], 0 }
   0x3   :  { %11 = vsyncpa [#allocation4 + $0x1], 0  ;;  %s506_s6 = smov 0   ;;  %s508_s7 = smov 0  }
   0x4   :  { %s510_s8 = smov 0   ;;  %s512_s9 = smov 0  }
   0x5   :  { %s514_s10 = smov 0   ;;  %s516_s11 = smov 0  }
   0x6 LB: > { %s311_s12 = sadd.s32 4294967295, %s483_s11   ;;  %s312_s13 = sadd.s32 4294967294, %s483_s11   ;;  %s483_s11 = sphi %s516_s11, %s17_s11   ;;  %s479_s10 = sphi %s514_s10, %s647_s10   ;;  %s475_s9 = sphi %s512_s9, %s646_s9   ;;  %s471_s8 = sphi %s510_s8, %s645_s8   ;;  %s467_s7 = sphi %s508_s7, %s644_s7   ;;  %s463_s6 = sphi %s506_s6, %s643_s6  }
   0x7   : > { %s32_s14 = sadd.s32 1, %s479_s10  ;;  %s47_s15 = sadd.s32 1, %s471_s8 }
   0x8   : > { %p34_p0 = scmp.ge.s32.totalorder %s32_s14, 4  ;;  %p54_p1 = scmp.ne.s32.totalorder %s471_s8, %s467_s7 }
   0x9   : > { %p55_p2 = scmp.eq.s32.totalorder %s483_s11, 0  ;;  %p60_p3 = scmp.ne.s32.totalorder %s467_s7, %s463_s6 }
   0xa   : > { %s649_s14 = smov (%p34_p0, %s32_s14), 0  ;;  %p61_p5 = scmp.eq.s32.totalorder %s311_s12, 0 }
   0xb   : > { %p547_p4 = por %p55_p2, %p54_p1  ;;  %s41_s17 = ssub.s32 %s479_s10, %s649_s14 }
   0xc   : > { %p88_p6 = scmp.eq.s32.totalorder %s311_s12, 3  ;;  %p45_p7 = scmp.eq.s32.totalorder %s41_s17, 0 }
   0xd   : > { %p553_p8 = por %p61_p5, %p60_p3  ;;  %p94_p10 = scmp.eq.s32.totalorder %s312_s13, 3 }
   0xe   : > { %p557_p9 = por %p88_p6, %p54_p1  ;;  %p341_p12 = scmp.lt.s32.totalorder %s483_s11, 4 }
   0xf   : > { %s562_s20 = scalar_select %p45_p7, %s471_s8, %s47_s15  }
  0x10   : > { %p564_p11 = por %p94_p10, %p60_p3  ;;  %s114_s22 = sand.u32 1, %s471_s8  }
  0x11   : > { %s320_s23 = smul.u32 24, %s114_s22  ;;  %s315_s24 = sshll.u32 %s479_s10, 6 }
  0x12   : > { %p573_p13 = pnand %p341_p12, %p547_p4  ;;  %s127_s28 = scalar_lea.hbm %s636_s0, %s315_s24 }
  0x13   : > { %s118_s29 = scalar_lea.vmem [#allocation2], %s320_s23  ;;  %s115_s2 = scalar_lea.sflag [#allocation3], %s114_s22 }
  0x14   : > { %s128_s30 = sshll.u32 %s118_s29, 4  ;;  %p403_p0 = pneg %p573_p13  ;;  %s129_s30 = int_to_ptr.vmem [resolvable:$true] %s128_s30 }
  0x15   : > { %s414_s3 = scalar_lea.vmem %s129_s30, 384  ;;  %s485_s4 = smov [#allocation2]  }
  0x16   : > { %p415_p1 = scmp.ne.s32.totalorder %s129_s30, %s414_s3  ;;  %s419_s5 = sshll.u32 %s485_s4, 4  ;;  %s420_s5 = int_to_ptr.vmem [resolvable:$false] %s419_s5 }
  0x17   : > { %s421_s12 = scalar_lea.vmem %s420_s5, 768  ;;  %p422_p4 = scmp.lt.s32.totalorder %s129_s30, %s420_s5 }
  0x18   : > { %p417_p2 = pnand %p415_p1, %p403_p0  ;;  %p423_p5 = scmp.lt.s32.totalorder %s421_s12, %s414_s3 }
  0x1a   : > { %p418_p3 = pneg %p417_p2  ;;  %p424_p6 = por %p423_p5, %p422_p4 }
  0x1c   : > { %p425_p7 = pnand %p424_p6, %p418_p3 }
  0x1e   : > { %428 = shalt.err (!%p425_p7)
}
  0x1f   : > { %s486_s13 = smov 256   ;;  %s487_s15 = smov 64  }
  0x20   : > { %s488_s16 = smov 4   ;;  %p316_p10 = scmp.ge.s32.totalorder %s483_s11, 1 }
  0x21   : > { %336 = dma.hbm_to_vmem [thread:$0]  (!%p573_p13), %s127_s28, 384, %s129_s30, %s115_s2, %s486_s13, %s487_s15, %s488_s16  }
  0x22   : > { %p136_p12 = scmp.lt.s32.totalorder %s483_s11, 5 }
  0x24   : > { %p137_p0 = pnand %p316_p10, %p136_p12 }
  0x25   : > { %s587_s17 = sand.u32 (!%p137_p0), 1, %s467_s7  }
  0x26   : > { %140 = sbr.rel (%p137_p0) target bundleno = 56 (0x38), region = 24  ;;  %s143_s23 = scalar_lea.sflag (!%p137_p0), [#allocation3], %s587_s17 }
  0x27   : > { %s321_s22 = smul.u32 (!%p137_p0), 24, %s587_s17 }
  0x29   : > { %s146_s24 = scalar_lea.vmem (!%p137_p0), [#allocation2], %s321_s22 }
  0x2b   : > { %454 = dma.done.wait (%p553_p8), %s143_s23, 384  }
  0x2c   : > { %456 = vsyncadd (%p553_p8), %s143_s23, 4294966912  ;;  %v167_v0 = vld [vmem:[%s146_s24] sm:$0xff]   ;;  %v169_v1 = vld [vmem:[%s146_s24 + $0x8] sm:$0xff]   ;;  %s164_s25 = scalar_lea.vmem [#allocation5], %s321_s22  ;;  %s180_s26 = scalar_lea.sflag [#allocation4], %s587_s17 }
  0x2d   : > { %v171_v2 = vld [vmem:[%s146_s24 + $0x10] sm:$0xff]   ;;  %173 = vst [vmem:[%s164_s25] sm:$0xff] %v167_v0   ;;  %175 = vst [vmem:[%s164_s25 + $0x8] sm:$0xff] %v169_v1  }
  0x2e   : > { %177 = vst [vmem:[%s164_s25 + $0x10] sm:$0xff] %v171_v2  }
  0x2f   : > { %s322_s27 = smul.u32 192, %s475_s9  ;;  %s207_s28 = sshll.u32 %s164_s25, 4  ;;  %s208_s28 = int_to_ptr.vmem [resolvable:$true] %s207_s28 }
  0x30   : > { %s489_s2 = smov 192   ;;  %s490_s3 = smov 768  }
  0x31   : > { %s196_s30 = scalar_lea.hbm %s637_s1, %s322_s27  ;;  %325 = sst [smem:[#allocation7]] (%p557_p9), %s489_s2 }
  0x32   : > { %326 = sst [smem:[#allocation7 + $0x1]] (%p557_p9), %s490_s3  ;;  %s491_s4 = smov 3  }
  0x33   : > { %327 = sst [smem:[#allocation7 + $0x2]] (%p557_p9), %s491_s4  ;;  %s492_s5 = smov 64  }
  0x34   : > { %328 = sst [smem:[#allocation7 + $0x3]] (%p557_p9), %s492_s5  ;;  %s493_s9 = smov 4  }
  0x35   : > { %329 = sst [smem:[#allocation7 + $0x4]] (%p557_p9), %s492_s5  ;;  %s494_s12 = smov 131072  }
  0x36   : > { %330 = sst [smem:[#allocation7 + $0x5]] (%p557_p9), %s493_s9  ;;  %s495_s13 = smov 0  }
  0x37   : > { %331 = dma.general (%p557_p9), %s208_s28, 384, %s196_s30, %s180_s26, %s494_s12, [#allocation7], %s495_s13, 0  }
  0x38 PF: > { %p342_p8 = scmp.ge.s32.totalorder %s483_s11, 2  ;;  %s235_s15 = sand.u32 1, %s463_s6  }
  0x39   : > { %s236_s16 = scalar_lea.sflag [#allocation4], %s235_s15 }
  0x3a   : > { %p338_p13 = pnand %p342_p8, %p564_p11 }
  0x3c   : > { %p339_p1 = pneg %p338_p13 }
  0x3e   : > { %458 = dma.done.wait (%p339_p1), %s236_s16, 384  }
  0x3f   : > { %460 = vsyncadd (%p339_p1), %s236_s16, 4294966912  ;;  %s17_s11 = sadd.s32 1, %s483_s11   ;;  %s643_s6 = smov %s467_s7 }
  0x40   : > { %p14_p2 = scmp.ge.s32.totalorder %s17_s11, 6   ;;  %s644_s7 = smov %s471_s8 }
  0x41   : > { %s645_s8 = smov %s562_s20  ;;  %s646_s9 = smov %s479_s10 }
  0x42   : > { %s647_s10 = smov %s649_s14  ;;  %16 = sbr.rel (!%p14_p2) target bundleno = 6 (0x6), region = 74 }
  0x47   :  { %241 = vsyncpa [#allocation3], 1 }
  0x48   :  { %243 = vsyncpa [#allocation3 + $0x1], 1 }
  0x49   :  { %244 = vsyncpa [#allocation4], 1 }
  0x4a   :  { %246 = vsyncpa [#allocation4 + $0x1], 1 }

</bundles_post_ra>
